<compile_context>
chip_gen: v5e
topology: v5e:2x2
jax: 0.10.0
libtpu: 0.0.40
codegen_flags: <defaults>
</compile_context>

<pallas_src>
import math

import jax
import jax.numpy as jnp
from jax.experimental import pallas as pl
from jax.experimental.pallas import tpu as pltpu

_LANES = 128                         # lane width for the tiny, no-grid path
_WIDE_LANES = 512                    # lane-dense slab width for the tiled path
_ROW_BLOCK = 512                     # rows per block: (512, 512) f32 = 1 MiB/buffer
_SINGLE_BLOCK_MAX_ELEMS = 256 * 1024 # <= 1 MiB f32 -> single VMEM block, no grid


def _fused_elementwise_kernel(x_ref, o_ref):
    # TODO(synk): dropout is identity only because p == 0.0; a nonzero p would
    # need pltpu.prng_seed / prng_random_bits masking and 1/(1-p) scaling.
    x = x_ref[...]
    t = x + x                  # a1 (== a2, since dropout(p=0) is identity)
    o_ref[...] = t * t + t     # a3 + a2


def _run_single_block(flat, total):
    """Tiny inputs: one whole-array VMEM block, no grid, lane-dense layout."""
    pad = (-total) % _LANES
    if pad:
        flat = jnp.pad(flat, (0, pad))
    rows = flat.shape[0] // _LANES
    x_view = flat.reshape(rows, _LANES)
    out = pl.pallas_call(
        _fused_elementwise_kernel,
        out_shape=jax.ShapeDtypeStruct(x_view.shape, x_view.dtype),
        in_specs=[pl.BlockSpec(memory_space=pltpu.MemorySpace.VMEM)],
        out_specs=pl.BlockSpec(memory_space=pltpu.MemorySpace.VMEM),
    )(x_view)
    return out.reshape(-1)[:total]


def _run_tiled(flat, total):
    """Large inputs: lane-dense (rows, 512) slab, row grid, double-buffered DMA."""
    pad = (-total) % _WIDE_LANES
    if pad:
        flat = jnp.pad(flat, (0, pad))
    rows = flat.shape[0] // _WIDE_LANES
    x_view = flat.reshape(rows, _WIDE_LANES)

    out = pl.pallas_call(
        _fused_elementwise_kernel,
        out_shape=jax.ShapeDtypeStruct(x_view.shape, x_view.dtype),
        grid=(pl.cdiv(rows, _ROW_BLOCK),),
        in_specs=[pl.BlockSpec((_ROW_BLOCK, _WIDE_LANES), lambda i: (i, 0))],
        out_specs=pl.BlockSpec((_ROW_BLOCK, _WIDE_LANES), lambda i: (i, 0)),
        compiler_params=pltpu.CompilerParams(
            # Independent row tiles: lets v7x shard the loop across both TCs.
            dimension_semantics=("parallel",),
            # ~4 MiB actually used; 32 MiB is safe on v5e/v6e/v7x and leaves
            # headroom above the 16 MiB v5e scoped default.
            vmem_limit_bytes=32 * 1024 * 1024,
        ),
    )(x_view)
    return out.reshape(-1)[:total]


def model_forward(x):
    orig_shape = x.shape
    total = math.prod(orig_shape)
    flat = x.reshape(-1)
    if total <= _SINGLE_BLOCK_MAX_ELEMS:
        out_flat = _run_single_block(flat, total)
    else:
        out_flat = _run_tiled(flat, total)
    return out_flat.reshape(orig_shape)


def _reference(x):
    a1 = x + x
    a2 = a1              # dropout(p=0.0, training=True) == identity
    a3 = a1 * a1
    return a2 + a3


if __name__ == "__main__":
    key = jax.random.PRNGKey(0)

    # Shape from the original module spec: x1 = torch.randn(16, 8)
    x1 = jax.random.normal(key, (16, 8), dtype=jnp.float32)
    out = model_forward(x1)
    jax.block_until_ready(out)
    ref = _reference(x1)
    assert out.shape == ref.shape
    assert jnp.allclose(out, ref, atol=1e-6, rtol=1e-6)

    # Also exercise the tiled/grid path (odd size -> padding + ragged last block).
    x_big = jax.random.normal(jax.random.PRNGKey(1), (1000, 700), dtype=jnp.float32)
    out_big = model_forward(x_big)
    jax.block_until_ready(out_big)
    assert jnp.allclose(out_big, _reference(x_big), atol=1e-5, rtol=1e-5)

    print("KERNEL_OK")
</pallas_src>

<mosaic_0001>
module attributes {stable_mosaic.version = 11 : i64} {
  func.func @_fused_elementwise_kernel(%arg0: memref<1x128xf32, #tpu.memory_space<vmem>>, %arg1: memref<1x128xf32, #tpu.memory_space<vmem>>) attributes {dimension_semantics = [], scalar_prefetch = 0 : i64, scratch_operands = 0 : i64, tpu.core_type = #tpu.core_type<tc>} {
    %c0 = arith.constant 0 : index
    %c0_0 = arith.constant 0 : index
    %0 = vector.load %arg0[%c0, %c0_0] : memref<1x128xf32, #tpu.memory_space<vmem>>, vector<1x128xf32>
    %1 = arith.addf %0, %0 : vector<1x128xf32>
    %2 = arith.mulf %1, %1 : vector<1x128xf32>
    %3 = arith.addf %2, %1 : vector<1x128xf32>
    %c0_1 = arith.constant 0 : index
    %c0_2 = arith.constant 0 : index
    %4 = vector.load %arg1[%c0_1, %c0_2] : memref<1x128xf32, #tpu.memory_space<vmem>>, vector<1x128xf32>
    tpu.vector_store %arg1[%c0_1, %c0_2], %3 {strides = array<i32>} : memref<1x128xf32, #tpu.memory_space<vmem>>, vector<1x128xf32>,
    return
  }
}

</mosaic_0001>

<bundles_post_ra>
// kernel: tpu_custom_call.1
= control target key start
LH: loop header
LB: loop body
LE: loop exit
PB: predicated region body
PF: predicated region fallthrough
CT: control target
= control target key end

     0   :  { %6 = vsyncpa [#allocation3], 0  ;;  %s117_s0 = inlined_call_operand.hbm [shape: f32[1,128], index: 0, kind: input, shape index: {}]   ;;  %s118_s1 = inlined_call_operand.hbm [shape: f32[1,128], index: 1, kind: output, shape index: {}]  }
   0x1   :  { %7 = vsyncpa [#allocation4], 0  ;;  %s13_s8 = sshll.u32 %s117_s0, 4  ;;  %s99_s9 = smov [#allocation2]   ;;  %s14_s8 = int_to_ptr.hbm [resolvable:$true] %s13_s8 }
   0x2   :  { %s15_s10 = sshll.u32 %s99_s9, 4  ;;  %s16_s10 = int_to_ptr.vmem [resolvable:$true] %s15_s10 }
   0x3   :  { %18 = dma.hbm_to_vmem [thread:$0]  %s14_s8, 16, %s16_s10, [#allocation3]  }
   0x4   :  { %95 = dma.done.wait [#allocation3], 16  }
   0x5   :  { %96 = vsyncadd [#allocation3], 4294967280  ;;  %v23_v0 = vld [vmem:[#allocation2] sm:$0x1]  ;;  %s100_s11 = smov [#allocation5]   ;;  %s35_s15 = sshll.u32 %s118_s1, 4  ;;  %s36_s15 = int_to_ptr.hbm [resolvable:$true] %s35_s15 }
   0x6   :  { %v24_v1 = vadd.f32 %v23_v0, %v23_v0  ;;  %s33_s12 = sshll.u32 %s100_s11, 4  ;;  %s34_s12 = int_to_ptr.vmem [resolvable:$true] %s33_s12 }
   0x8   :  { %v25_v2 = vmul.f32 %v24_v1, %v24_v1 }
   0xa   :  { %v26_v3 = vadd.f32 %v25_v2, %v24_v1 }
   0xc   :  { %27 = vst [vmem:[#allocation5] sm:$0x1] %v26_v3 }
   0xd   :  { %38 = dma.vmem_to_hbm [thread:$0]  %s34_s12, 16, %s36_s15, [#allocation4]  }
   0xe   :  { %97 = dma.done.wait [#allocation4], 16  }
   0xf   :  { %98 = vsyncadd [#allocation4], 4294967280 }
  0x10   :  { %43 = vsyncpa [#allocation3], 1 }
  0x11   :  { %44 = vsyncpa [#allocation4], 1 }

</bundles_post_ra>
